<compile_context>
chip_gen: v7x
topology: tpu7x:2x2x1
jax: 0.10.0
libtpu: 0.0.40
codegen_flags: <defaults>
</compile_context>

<pallas_src>
import functools

import jax
import jax.numpy as jnp
from jax.experimental import pallas as pl
from jax.experimental.pallas import tpu as pltpu

_SUBLANE = 8
_ACC_ROWS = 8  # resident accumulator height per super-tile (one f32 vreg group)


def _round_up(x: int, m: int) -> int:
    return ((x + m - 1) // m) * m


def _vmem_input_budget_bytes() -> int:
    """Per-generation budget for one grid step's double-buffered wide inputs."""
    try:
        kind = jax.devices()[0].device_kind.lower()
    except Exception:
        return 8 << 20
    if "v6" in kind:
        return 24 << 20        # v6e: 32 MiB scoped default / 128 MiB physical
    if "v5 lite" in kind or "v5e" in kind or "v5litepod" in kind:
        return 12 << 20        # v5e: 16 MiB scoped default
    return 16 << 20            # v7x (64 MiB physical VMEM) & default: modest tiles + both TCs


def _sublane_multiple(dtype) -> int:
    # Sub-32-bit dtypes pack rows along sublanes: bf16 -> 16 rows/vreg, int8 -> 32.
    return _SUBLANE * max(1, 4 // jnp.dtype(dtype).itemsize)


def _pick_batch_tile(batch: int, bytes_per_row: int, sub: int) -> int:
    """Largest batch tile (multiple of `sub`, <= 1024) whose double-buffered inputs fit."""
    per_row = 2 * bytes_per_row                    # 2 = Pallas double buffering
    tb = _vmem_input_budget_bytes() // max(per_row, 1)
    tb = int(min(1024, max(sub, tb)))
    tb = (tb // sub) * sub
    tb = min(tb, _round_up(batch, sub))
    return max(sub, tb)


# --------------------------------------------------------------------------
# Kernels
# --------------------------------------------------------------------------
def _cce_probs_kernel(y_pred_ref, y_true_ref, partial_ref, *, batch, tb, steps):
    """Dense probability / one-hot / soft targets [tb, C]."""
    @pl.when(pl.program_id(1) == 0)
    def _init():
        partial_ref[...] = jnp.zeros_like(partial_ref)

    logits = y_pred_ref[...].astype(jnp.float32)      # [tb, C]
    targets = y_true_ref[...].astype(jnp.float32)     # [tb, C]
    tbk, c = logits.shape

    # Ragged-tail mask: rows past the true batch carry undefined block data.
    # They are removed with a SELECT so NaN/Inf garbage cannot propagate.
    tile = pl.program_id(0) * steps + pl.program_id(1)
    row = tile * tb + jax.lax.broadcasted_iota(jnp.int32, (tbk, 1), 0)
    valid = row < batch                                # [tb, 1]

    # Numerically stable per-row log-sum-exp over the class (lane) axis.
    row_max = jnp.max(logits, axis=-1, keepdims=True)                  # XLU
    shifted = logits - row_max
    lse = jnp.log(jnp.sum(jnp.exp(shifted), axis=-1, keepdims=True))   # EUP + XLU

    # -t * log_softmax == t * (lse - shifted); fused, no log_probs temporary.
    contrib = jnp.where(valid, targets * (lse - shifted), 0.0)          # [tb, C]

    # Accumulate into the (8, C) vreg-height resident block: plain VPU adds over
    # sublane groups; no per-step cross-sublane XLU reduction, unmasked-row store.
    partial_ref[...] += contrib.reshape(tbk // _ACC_ROWS, _ACC_ROWS, c).sum(axis=0)


def _cce_labels_kernel(y_pred_ref, labels_ref, partial_ref, *, batch, tb, steps):
    """Integer class-index targets [tb, 1]; one-hot selection built in-kernel."""
    @pl.when(pl.program_id(1) == 0)
    def _init():
        partial_ref[...] = jnp.zeros_like(partial_ref)

    logits = y_pred_ref[...].astype(jnp.float32)      # [tb, C]
    labels = labels_ref[...]                           # [tb, 1] int32
    tbk, c = logits.shape

    tile = pl.program_id(0) * steps + pl.program_id(1)
    row = tile * tb + jax.lax.broadcasted_iota(jnp.int32, (tbk, 1), 0)
    valid = row < batch                                # [tb, 1]

    row_max = jnp.max(logits, axis=-1, keepdims=True)
    shifted = logits - row_max
    lse = jnp.log(jnp.sum(jnp.exp(shifted), axis=-1, keepdims=True))

    lane = jax.lax.broadcasted_iota(jnp.int32, (tbk, c), 1)
    hit = (lane == labels) & valid                     # ragged rows never hit
    contrib = jnp.where(hit, lse - shifted, 0.0)       # SELECT: drops garbage-row NaNs

    partial_ref[...] += contrib.reshape(tbk // _ACC_ROWS, _ACC_ROWS, c).sum(axis=0)


# --------------------------------------------------------------------------
# Launch helper + wrappers
# --------------------------------------------------------------------------
def _launch(kernel, wide_inputs, block_shapes, batch, n_classes, tb, bytes_accessed):
    n_tiles = pl.cdiv(batch, tb)
    n_super = 2 if n_tiles >= 2 else 1     # shard batch super-tiles across v7x's 2 TCs
    steps = pl.cdiv(n_tiles, n_super)
    last_tile = n_tiles - 1

    def clamp_map(p, i):
        # Clamp over-shooting (p, i) combos to the last (partial) tile; the
        # in-kernel row mask zeroes their contribution.
        return (jnp.minimum(p * steps + i, last_tile), 0)

    partial = pl.pallas_call(
        functools.partial(kernel, batch=batch, tb=tb, steps=steps),
        out_shape=jax.ShapeDtypeStruct((n_super * _ACC_ROWS, n_classes), jnp.float32),
        grid=(n_super, steps),
        in_specs=[pl.BlockSpec(shape, clamp_map) for shape in block_shapes],
        out_specs=pl.BlockSpec((_ACC_ROWS, n_classes), lambda p, i: (p, 0)),
        compiler_params=pltpu.CompilerParams(
            dimension_semantics=("parallel", "arbitrary")),
        cost_estimate=pl.CostEstimate(
            flops=8 * batch * n_classes,
            transcendentals=batch * (n_classes + 1),
            bytes_accessed=int(bytes_accessed)),
    )(*wide_inputs)
    # Tiny final reduction + mean in JAX.
    return jnp.sum(partial) / jnp.float32(batch)


def _cce_from_probs(y_pred: jax.Array, y_true: jax.Array, *, batch_tile=None) -> jax.Array:
    B, C = y_pred.shape
    assert y_true.shape == (B, C)
    sub = max(_sublane_multiple(y_pred.dtype), _sublane_multiple(y_true.dtype))
    bytes_per_row = C * (jnp.dtype(y_pred.dtype).itemsize + jnp.dtype(y_true.dtype).itemsize)
    tb = batch_tile or _pick_batch_tile(B, bytes_per_row, sub)
    if tb % _ACC_ROWS != 0:
        raise ValueError("batch_tile must be a multiple of 8")
    return _launch(_cce_probs_kernel, (y_pred, y_true), [(tb, C), (tb, C)],
                   B, C, tb, bytes_accessed=y_pred.nbytes + y_true.nbytes)


def _cce_from_labels(y_pred: jax.Array, labels: jax.Array, *, batch_tile=None) -> jax.Array:
    B, C = y_pred.shape
    assert labels.shape == (B,)
    sub = _sublane_multiple(y_pred.dtype)
    bytes_per_row = C * jnp.dtype(y_pred.dtype).itemsize
    tb = batch_tile or _pick_batch_tile(B, bytes_per_row, sub)
    if tb % _ACC_ROWS != 0:
        raise ValueError("batch_tile must be a multiple of 8")
    lab = labels.astype(jnp.int32).reshape(B, 1)
    return _launch(_cce_labels_kernel, (y_pred, lab), [(tb, C), (tb, 1)],
                   B, C, tb, bytes_accessed=y_pred.nbytes + lab.size * 4)


def categorical_cross_entropy_loss(y_pred: jax.Array, y_true: jax.Array, *, batch_tile=None) -> jax.Array:
    """torch.nn.CrossEntropyLoss(reduction='mean').

    y_true: [B] integer class indices (PREFERRED when labels are one-hot —
    halves HBM traffic), or [B, C] probability / one-hot / soft labels in any
    float dtype (bf16 accepted; compute is f32 inside the kernel).
    """
    if y_true.ndim == 1 and jnp.issubdtype(y_true.dtype, jnp.integer):
        return _cce_from_labels(y_pred, y_true, batch_tile=batch_tile)
    return _cce_from_probs(y_pred, y_true, batch_tile=batch_tile)


# --------------------------------------------------------------------------
# Pure-JAX references (match torch.nn.CrossEntropyLoss, mean reduction)
# --------------------------------------------------------------------------
def _reference_probs(y_pred, y_true):
    logp = jax.nn.log_softmax(y_pred.astype(jnp.float32), axis=-1)
    return jnp.mean(-jnp.sum(y_true.astype(jnp.float32) * logp, axis=-1))


def _reference_labels(y_pred, labels):
    logp = jax.nn.log_softmax(y_pred.astype(jnp.float32), axis=-1)
    picked = jnp.take_along_axis(logp, labels[:, None].astype(jnp.int32), axis=-1)[:, 0]
    return jnp.mean(-picked)


if __name__ == "__main__":
    key = jax.random.PRNGKey(0)
    k1, k2, k3 = jax.random.split(key, 3)

    # Small shape consistent with the ERC module: batch=8 utterances, 7 emotion classes.
    B, C = 8, 7
    y_pred = jax.random.normal(k1, (B, C), dtype=jnp.float32)
    labels = jax.random.randint(k2, (B,), 0, C, dtype=jnp.int32)
    y_true = jax.nn.one_hot(labels, C, dtype=jnp.float32)

    loss_probs = jax.block_until_ready(categorical_cross_entropy_loss(y_pred, y_true))
    loss_labels = jax.block_until_ready(categorical_cross_entropy_loss(y_pred, labels))
    ref = _reference_probs(y_pred, y_true)
    assert jnp.allclose(loss_probs, ref, atol=1e-5, rtol=1e-5), (loss_probs, ref)
    assert jnp.allclose(loss_labels, ref, atol=1e-5, rtol=1e-5), (loss_labels, ref)

    # Multi-tile grid with a ragged last tile (B not a multiple of the tile),
    # soft labels, 2 super-tiles ("parallel" axis), in-kernel tail masking.
    B2, C2 = 50, 7
    y_pred2 = jax.random.normal(k3, (B2, C2), dtype=jnp.float32)
    soft = jax.nn.softmax(jax.random.normal(k2, (B2, C2), dtype=jnp.float32), axis=-1)
    loss2 = jax.block_until_ready(categorical_cross_entropy_loss(y_pred2, soft, batch_tile=16))
    ref2 = _reference_probs(y_pred2, soft)
    assert jnp.allclose(loss2, ref2, atol=1e-4, rtol=1e-4), (loss2, ref2)

    labels2 = jax.random.randint(k1, (B2,), 0, C2, dtype=jnp.int32)
    loss2l = jax.block_until_ready(categorical_cross_entropy_loss(y_pred2, labels2, batch_tile=16))
    ref2l = _reference_labels(y_pred2, labels2)
    assert jnp.allclose(loss2l, ref2l, atol=1e-4, rtol=1e-4), (loss2l, ref2l)

    # bf16 logits path (halves HBM bytes; compute stays f32 inside the kernel).
    y_pred_bf16 = y_pred2.astype(jnp.bfloat16)
    loss_bf16 = jax.block_until_ready(categorical_cross_entropy_loss(y_pred_bf16, labels2, batch_tile=16))
    ref_bf16 = _reference_labels(y_pred_bf16, labels2)
    assert jnp.allclose(loss_bf16, ref_bf16, atol=1e-3, rtol=1e-3), (loss_bf16, ref_bf16)

    print("KERNEL_OK")
</pallas_src>

<mosaic_0001>
module attributes {stable_mosaic.version = 11 : i64} {
  func.func @_cce_probs_kernel(%arg0: i32, %arg1: i32, %arg2: memref<8x7xf32, #tpu.memory_space<vmem>>, %arg3: memref<8x7xf32, #tpu.memory_space<vmem>>, %arg4: memref<8x7xf32, #tpu.memory_space<vmem>>) attributes {dimension_semantics = [#tpu.dimension_semantics<parallel>, #tpu.dimension_semantics<arbitrary>], iteration_bounds = array<i64: 1, 1>, scalar_prefetch = 0 : i64, scratch_operands = 0 : i64, tpu.core_type = #tpu.core_type<tc>, window_params = [{transform_indices = @transform_0, window_bounds = array<i64: 8, 7>}, {transform_indices = @transform_1, window_bounds = array<i64: 8, 7>}, {transform_indices = @transform_2, window_bounds = array<i64: 8, 7>}]} {
    %c0_i32 = arith.constant 0 : i32
    %0 = arith.cmpi eq, %arg1, %c0_i32 : i32
    %1 = arith.extui %0 : i1 to i32
    %c0_i32_0 = arith.constant 0 : i32
    %2 = arith.cmpi ne, %1, %c0_i32_0 : i32
    scf.if %2 {
      %cst_12 = arith.constant 0.000000e+00 : f32
      %33 = vector.broadcast %cst_12 : f32 to vector<8x7xf32>
      %c0_13 = arith.constant 0 : index
      %c0_14 = arith.constant 0 : index
      %34 = vector.load %arg4[%c0_13, %c0_14] : memref<8x7xf32, #tpu.memory_space<vmem>>, vector<8x7xf32>
      tpu.vector_store %arg4[%c0_13, %c0_14], %33 {strides = array<i32>} : memref<8x7xf32, #tpu.memory_space<vmem>>, vector<8x7xf32>,
    } else {
    }
    %c0 = arith.constant 0 : index
    %c0_1 = arith.constant 0 : index
    %3 = vector.load %arg2[%c0, %c0_1] : memref<8x7xf32, #tpu.memory_space<vmem>>, vector<8x7xf32>
    %c0_2 = arith.constant 0 : index
    %c0_3 = arith.constant 0 : index
    %4 = vector.load %arg3[%c0_2, %c0_3] : memref<8x7xf32, #tpu.memory_space<vmem>>, vector<8x7xf32>
    %c1_i32 = arith.constant 1 : i32
    %5 = arith.muli %arg0, %c1_i32 : i32
    %6 = arith.addi %5, %arg1 : i32
    %c8_i32 = arith.constant 8 : i32
    %7 = arith.muli %6, %c8_i32 : i32
    %8 = tpu.iota {dimensions = array<i32: 0>} : vector<8x1xi32>
    %9 = vector.broadcast %7 : i32 to vector<8x1xi32>
    %10 = arith.addi %9, %8 : vector<8x1xi32>
    %c8_i32_4 = arith.constant 8 : i32
    %11 = vector.broadcast %c8_i32_4 : i32 to vector<8x1xi32>
    %12 = arith.cmpi slt, %10, %11 : vector<8x1xi32>
    %cst = arith.constant dense<0xFF800000> : vector<8xf32>
    %13 = vector.multi_reduction <maximumf>, %3, %cst [1] : vector<8x7xf32> to vector<8xf32>
    %14 = vector.shape_cast %13 : vector<8xf32> to vector<8x1xf32>
    %15 = vector.broadcast %14 : vector<8x1xf32> to vector<8x7xf32>
    %16 = arith.subf %3, %15 : vector<8x7xf32>
    %17 = math.exp %16 : vector<8x7xf32>
    %cst_5 = arith.constant dense<0.000000e+00> : vector<8xf32>
    %18 = vector.multi_reduction <add>, %17, %cst_5 [1] : vector<8x7xf32> to vector<8xf32>
    %19 = vector.shape_cast %18 : vector<8xf32> to vector<8x1xf32>
    %20 = math.log %19 : vector<8x1xf32>
    %21 = vector.broadcast %20 : vector<8x1xf32> to vector<8x7xf32>
    %22 = arith.subf %21, %16 : vector<8x7xf32>
    %23 = arith.mulf %4, %22 : vector<8x7xf32>
    %cst_6 = arith.constant 0.000000e+00 : f32
    %24 = vector.shape_cast %12 : vector<8x1xi1> to vector<8x1xi1>
    %25 = vector.broadcast %24 : vector<8x1xi1> to vector<8x7xi1>
    %26 = vector.broadcast %cst_6 : f32 to vector<8x7xf32>
    %27 = arith.select %25, %23, %26 : vector<8x7xi1>, vector<8x7xf32>
    %c0_7 = arith.constant 0 : index
    %c0_8 = arith.constant 0 : index
    %28 = vector.load %arg4[%c0_7, %c0_8] : memref<8x7xf32, #tpu.memory_space<vmem>>, vector<8x7xf32>
    %29 = vector.shape_cast %27 : vector<8x7xf32> to vector<1x8x7xf32>
    %cst_9 = arith.constant dense<0.000000e+00> : vector<8x7xf32>
    %30 = vector.multi_reduction <add>, %29, %cst_9 [0] : vector<1x8x7xf32> to vector<8x7xf32>
    %31 = arith.addf %28, %30 : vector<8x7xf32>
    %c0_10 = arith.constant 0 : index
    %c0_11 = arith.constant 0 : index
    %32 = vector.load %arg4[%c0_10, %c0_11] : memref<8x7xf32, #tpu.memory_space<vmem>>, vector<8x7xf32>
    tpu.vector_store %arg4[%c0_10, %c0_11], %31 {strides = array<i32>} : memref<8x7xf32, #tpu.memory_space<vmem>>, vector<8x7xf32>,
    return
  }
  func.func @transform_0(%arg0: i32, %arg1: i32) -> (i32, i32) {
    %c1_i32 = arith.constant 1 : i32
    %0 = arith.muli %arg0, %c1_i32 : i32
    %1 = arith.addi %0, %arg1 : i32
    %c0_i32 = arith.constant 0 : i32
    %2 = arith.minsi %1, %c0_i32 : i32
    %c0_i32_0 = arith.constant 0 : i32
    %c0_i32_1 = arith.constant 0 : i32
    return %2, %c0_i32_0 : i32, i32
  }
  func.func @transform_1(%arg0: i32, %arg1: i32) -> (i32, i32) {
    %c1_i32 = arith.constant 1 : i32
    %0 = arith.muli %arg0, %c1_i32 : i32
    %1 = arith.addi %0, %arg1 : i32
    %c0_i32 = arith.constant 0 : i32
    %2 = arith.minsi %1, %c0_i32 : i32
    %c0_i32_0 = arith.constant 0 : i32
    %c0_i32_1 = arith.constant 0 : i32
    return %2, %c0_i32_0 : i32, i32
  }
  func.func @transform_2(%arg0: i32, %arg1: i32) -> (i32, i32) {
    %c0_i32 = arith.constant 0 : i32
    %c0_i32_0 = arith.constant 0 : i32
    return %arg0, %c0_i32 : i32, i32
  }
}

</mosaic_0001>

<bundles_post_ra>
// kernel: tpu_custom_call.1
= control target key start
LH: loop header
LB: loop body
LE: loop exit
PB: predicated region body
PF: predicated region fallthrough
CT: control target
= control target key end

     0   :  { %7 = vsyncpa [#allocation3], 0  ;;  %s247_s0 = inlined_call_operand.hbm [shape: f32[8,7], index: 0, kind: input, shape index: {}]   ;;  %s248_s1 = inlined_call_operand.hbm [shape: f32[8,7], index: 1, kind: input, shape index: {}]   ;;  %s249_s2 = inlined_call_operand.hbm [shape: f32[8,7], index: 2, kind: output, shape index: {}]  }
   0x1   :  { %8 = vsyncpa [#allocation6], 0 }
   0x2   :  { %9 = vsyncpa [#allocation4], 0  ;;  %s188_s9 = smov [#allocation2]   ;;  %s189_s11 = smov [#allocation5]  }
   0x3   :  { %s21_s10 = sshll.u32 %s188_s9, 4  ;;  %s36_s12 = sshll.u32 %s189_s11, 4  ;;  %s22_s10 = int_to_ptr.vmem [resolvable:$true] %s21_s10  ;;  %s37_s12 = int_to_ptr.vmem [resolvable:$true] %s36_s12 }
   0x4   :  { %s116_s15 = scalar_lea.hbm %s247_s0, 128 }
   0x5   :  { %p117_p0 = scmp.ne.s32.totalorder %s247_s0, %s116_s15  ;;  %p120_p1 = scmp.lt.u32.totalorder %s116_s15, %s247_s0 }
   0x7   :  { %p122_p2 = pnand %p120_p1, %p117_p0 }
   0x9   :  { %125 = shalt.err (!%p122_p2)
}
   0xa   :  { %s126_s20 = scalar_lea.vmem %s22_s10, 128  ;;  %p131_p4 = scmp.lt.s32.totalorder %s22_s10, %s22_s10 }
   0xb   :  { %p127_p3 = scmp.ne.s32.totalorder %s22_s10, %s126_s20  ;;  %p132_p5 = scmp.lt.s32.totalorder %s126_s20, %s126_s20 }
   0xd   :  { %p133_p6 = por %p132_p5, %p131_p4 }
   0xf   :  { %p134_p7 = pnand %p133_p6, %p127_p3 }
  0x11   :  { %137 = shalt.err (!%p134_p7)
}
  0x12   :  { %24 = dma.hbm_to_vmem [thread:$0]  %s247_s0, 128, %s22_s10, [#allocation3]  }
  0x13   :  { %s138_s25 = scalar_lea.hbm %s248_s1, 128 }
  0x14   :  { %p139_p8 = scmp.ne.s32.totalorder %s248_s1, %s138_s25  ;;  %p142_p9 = scmp.lt.u32.totalorder %s138_s25, %s248_s1 }
  0x16   :  { %p144_p10 = pnand %p142_p9, %p139_p8 }
  0x18   :  { %147 = shalt.err (!%p144_p10)
}
  0x19   :  { %s148_s30 = scalar_lea.vmem %s37_s12, 128  ;;  %p153_p12 = scmp.lt.s32.totalorder %s37_s12, %s37_s12 }
  0x1a   :  { %p149_p11 = scmp.ne.s32.totalorder %s37_s12, %s148_s30  ;;  %p154_p13 = scmp.lt.s32.totalorder %s148_s30, %s148_s30 }
  0x1c   :  { %p155_p0 = por %p154_p13, %p153_p12 }
  0x1e   :  { %p156_p1 = pnand %p155_p0, %p149_p11 }
  0x20   :  { %159 = shalt.err (!%p156_p1)
}
  0x21   :  { %39 = dma.hbm_to_vmem [thread:$0]  %s248_s1, 128, %s37_s12, [#allocation6]  }
  0x22   :  { %182 = dma.done.wait [#allocation3], 128  }
  0x23   :  { %183 = vsyncadd [#allocation3], 4294967168 }
  0x24   :  { %184 = dma.done.wait [#allocation6], 128  }
  0x25   :  { %185 = vsyncadd [#allocation6], 4294967168  ;;  %vm56_vm0 = vcmask 56320   ;;  %v190_v0 = vmov 0.0   ;;  %v58_v1 = vld [vmem:[#allocation2] sm:$0xff]  ;;  %v59_v11 = vld [vmem:[#allocation5] sm:$0xff] }
  0x26   :  { %57 = vst.msk [vmem:[#allocation7] sm:$0xff] %vm56_vm0, %v190_v0  ;;  %v68_v2 = vsel %vm56_vm0, %v58_v1, -inf  ;;  %s191_s1 = smov [#allocation7]  }
  0x27   :  { %69 = vmax.xlane.f32.xlu0 %v68_v2  ;;  %s94_s4 = sshll.u32 %s191_s1, 4  ;;  %s95_s4 = int_to_ptr.vmem [resolvable:$true] %s94_s4 }
  0x28   :  { %s160_s5 = scalar_lea.vmem %s95_s4, 128  ;;  %p165_p3 = scmp.lt.s32.totalorder %s95_s4, %s95_s4 }
  0x29   :  { %p161_p2 = scmp.ne.s32.totalorder %s95_s4, %s160_s5  ;;  %p166_p4 = scmp.lt.s32.totalorder %s160_s5, %s160_s5 }
  0x2b   :  { %p167_p5 = por %p166_p4, %p165_p3 }
  0x2d   :  { %v84_v13 = vld [vmem:[#allocation7] sm:$0xff]  ;;  %p168_p6 = pnand %p167_p5, %p161_p2 }
  0xb4   :  { %v70_v3 = vpop.xlane.xlu0 %69 }
  0xb5   :  { %v71_v4 = vsub.f32 %v58_v1, %v70_v3 }
  0xb7   :  { %v72_v5 = vmul.f32 1.442695, %v71_v4 }
  0xb9   :  { %112 = vpow2.f32 %v72_v5 }
  0xc3   :  { %v113_v6 = vpop.eup %112 }
  0xc4   :  { %v74_v7 = vsel %vm56_vm0, %v113_v6, 0.0 }
  0xc5   :  { %75 = vadd.xlane.f32.xlu0 %v74_v7 }
 0x152   :  { %v76_v8 = vpop.xlane.xlu0 %75 }
 0x153   :  { %114 = vlog2.f32 %v76_v8 }
 0x15d   :  { %v115_v9 = vpop.eup %114 }
 0x15e   :  { %v78_v10 = vmul.f32 0.6931472, %v115_v9 }
 0x160   :  { %v79_v12 = vsub.f32 %v78_v10, %v71_v4 }
 0x162   :  { %v80_v14 = vmul.f32 %v79_v12, %v59_v11 }
 0x164   :  { %v86_v15 = vadd.f32 %v84_v13, %v80_v14 }
 0x166   :  { %87 = vst.msk [vmem:[#allocation7] sm:$0xff] %vm56_vm0, %v86_v15 }
 0x167   :  { %171 = shalt.err (!%p168_p6)
}
 0x168   :  { %s172_s8 = scalar_lea.hbm %s249_s2, 128 }
 0x169   :  { %p173_p7 = scmp.ne.s32.totalorder %s249_s2, %s172_s8  ;;  %p176_p8 = scmp.lt.u32.totalorder %s172_s8, %s249_s2 }
 0x16b   :  { %p178_p9 = pnand %p176_p8, %p173_p7 }
 0x16d   :  { %181 = shalt.err (!%p178_p9)
}
 0x16e   :  { %97 = dma.vmem_to_hbm [thread:$0]  %s95_s4, 128, %s249_s2, [#allocation4]  }
 0x16f   :  { %186 = dma.done.wait [#allocation4], 128  }
 0x170   :  { %187 = vsyncadd [#allocation4], 4294967168 }
 0x171   :  { %101 = vsyncpa [#allocation3], 1 }
 0x172   :  { %102 = vsyncpa [#allocation6], 1 }
 0x173   :  { %103 = vsyncpa [#allocation4], 1 }

</bundles_post_ra>
